<compile_context>
chip_gen: v6e
topology: v6e:2x2x1
jax: 0.10.0
libtpu: 0.0.40
codegen_flags: <defaults>
</compile_context>

<pallas_src>
import functools

import jax
import jax.numpy as jnp
from jax.experimental import pallas as pl
from jax.experimental.pallas import tpu as pltpu


# --------------------------------------------------------------------------------- kernel
def _mha_weights_kernel(state_ref, x_ref, w1_ref, b1_ref, w2_ref, out_ref, *,
                        block_b, num_heads, seq_len, head_dim):
    """One grid step == one block of `block_b` batch elements, fully batched inside."""
    f32 = jnp.float32
    Bt, L, H, hd = block_b, seq_len, num_heads, head_dim

    s = state_ref[...][:, 0, :]                                          # (Bt, S)
    xb = x_ref[...]                                                      # (Bt, L, C)
    C = xb.shape[-1]

    # Hypernet layer 1 (Linear + ReLU).  Layer-1 weights are pre-tiled host-side so the
    # activations land directly in the (i*64+c | bias | 1) lane layout the fused dot expects.
    hq = jnp.maximum(jnp.dot(s, w1_ref[0], preferred_element_type=f32) + b1_ref[0], 0.0)  # (Bt,C)
    hk = jnp.maximum(jnp.dot(s, w1_ref[1], preferred_element_type=f32) + b1_ref[1], 0.0)  # (Bt,C)

    # Fused hypernet-layer-2 + bmm + in_proj (+ q scale): outer product (VPU) then one deep dot.
    uq = (xb * hq[:, None, :]).reshape(Bt * L, C)
    uk = (xb * hk[:, None, :]).reshape(Bt * L, C)
    q = jnp.dot(uq, w2_ref[0], preferred_element_type=f32).reshape(Bt, L, H * hd)  # (Bt, L, E)
    k = jnp.dot(uk, w2_ref[1], preferred_element_type=f32).reshape(Bt, L, H * hd)  # (Bt, L, E)

    # Heads folded into the batch dim: one batched score matmul + one softmax pass.
    qh = jnp.concatenate([q[:, :, h * hd:(h + 1) * hd] for h in range(H)], axis=0)  # (H*Bt,L,hd)
    kh = jnp.concatenate([k[:, :, h * hd:(h + 1) * hd] for h in range(H)], axis=0)
    sc = jnp.einsum('bld,bmd->blm', qh, kh, preferred_element_type=f32)             # (H*Bt,L,L)

    m = jnp.max(sc, axis=-1, keepdims=True)
    e = jnp.exp(sc - m)
    # Exact softmax (rows sum to 1) with the 1/num_heads head-average folded into the normalizer.
    p = e * ((1.0 / H) / jnp.sum(e, axis=-1, keepdims=True))

    acc = p[0:Bt]
    for h in range(1, H):                                                # H-1 full-tensor adds
        acc = acc + p[h * Bt:(h + 1) * Bt]
    out_ref[...] = acc


# --------------------------------------------------------------------------- host-side prep
def _prep_params(params, *, num_heads, embedding_size, input_size):
    """Constant-fold & relayout parameters (once per call; weight composition + layout glue).

    Returns three stacked arrays (q path at index 0, k path at index 1):
      w1_stack (2, S, C): layer-1 weight tiled I times along its 64 outputs, plus I+1 zero
                          columns whose bias is 1 (constant-one lanes drive the bias rows).
      b1_stack (2, 1, C): matching layer-1 bias.
      w2_stack (2, C, E): layer-2 weight composed with the in_proj q/k projection (and the
                          1/sqrt(head_dim) scale on q); rows [I*64 : I*64+I] carry the layer-2
                          bias composed with in_proj, row C-1 carries the in_proj bias.
    """
    E, H, I = embedding_size, num_heads, input_size
    hd = E // H
    scale = 1.0 / (hd ** 0.5)

    in_w, in_b = params["in_proj_weight"], params["in_proj_bias"]

    def fold(hyper, proj_w, proj_b, sc):
        w1, b1, w2, b2 = hyper                       # (64,S), (64,), (I*E,64), (I*E,)
        S = w1.shape[1]
        w1_big = jnp.concatenate(
            [jnp.tile(w1.T, (1, I)), jnp.zeros((S, I + 1), w1.dtype)], axis=1)       # (S, C)
        b1_big = jnp.concatenate(
            [jnp.tile(b1, I), jnp.ones((I + 1,), b1.dtype)])[None, :]                # (1, C)
        P = sc * proj_w.T                                                            # (E, E)
        A = jnp.einsum('iec,ed->icd', w2.reshape(I, E, 64), P).reshape(I * 64, E)    # (I*64, E)
        Bm = b2.reshape(I, E) @ P                                                    # (I, E)
        pr = (sc * proj_b)[None, :]                                                  # (1, E)
        w2_big = jnp.concatenate([A, Bm, pr], axis=0)                                # (C, E)
        return w1_big, b1_big, w2_big

    w1q, b1q, w2q = fold(params["hyper_q"], in_w[:E], in_b[:E], scale)
    w1k, b1k, w2k = fold(params["hyper_k"], in_w[E:2 * E], in_b[E:2 * E], 1.0)

    return (jnp.stack([w1q, w1k]), jnp.stack([b1q, b1k]), jnp.stack([w2q, w2k]))


def _pick_batch_block(batch, cap=32):
    """Largest divisor of `batch` <= cap, preferring >= 2 grid steps (v7x has 2 TensorCores)."""
    divisors = [d for d in range(1, min(batch, cap) + 1) if batch % d == 0]
    two_step = [d for d in divisors if batch // d >= 2]
    return max(two_step) if two_step else max(divisors)


# -------------------------------------------------------------------------------- wrapper
def multihead_module_weights(state, inputs, params, *, num_heads, embedding_size):
    B, S = state.shape
    _, L, I = inputs.shape
    E = embedding_size
    hd = E // num_heads
    C = I * 64 + I + 1

    block_b = _pick_batch_block(B)
    grid = (B // block_b,)

    w1_stack, b1_stack, w2_stack = _prep_params(
        params, num_heads=num_heads, embedding_size=E, input_size=I)

    # Layout plumbing: x replicated into the fused-contraction layout, with trailing
    # [x | 1] lanes that drive the folded bias rows.
    x_big = jnp.concatenate(
        [jnp.repeat(inputs, 64, axis=-1), inputs,
         jnp.ones(inputs.shape[:-1] + (1,), inputs.dtype)], axis=-1)        # (B, L, C)
    state3 = state[:, None, :]                                              # (B, 1, S)

    kernel = functools.partial(_mha_weights_kernel, block_b=block_b,
                               num_heads=num_heads, seq_len=L, head_dim=hd)

    grid_spec = pltpu.PrefetchScalarGridSpec(
        num_scalar_prefetch=0,
        grid=grid,
        in_specs=[
            pl.BlockSpec((block_b, 1, S), lambda g: (g, 0, 0)),
            pl.BlockSpec((block_b, L, C), lambda g: (g, 0, 0)),
            pl.BlockSpec((2, S, C), lambda g: (0, 0, 0)),       # resident packed constants
            pl.BlockSpec((2, 1, C), lambda g: (0, 0, 0)),
            pl.BlockSpec((2, C, E), lambda g: (0, 0, 0)),
        ],
        out_specs=pl.BlockSpec((block_b, L, L), lambda g: (g, 0, 0)),
    )

    return pl.pallas_call(
        kernel,
        out_shape=jax.ShapeDtypeStruct((B, L, L), jnp.float32),
        grid_spec=grid_spec,
        compiler_params=pltpu.CompilerParams(dimension_semantics=("parallel",)),
    )(state3, x_big, w1_stack, b1_stack, w2_stack)


# --------------------------------------------------------------------- params / reference
def init_params(key, state_size, input_size, embedding_size):
    def linear(k, fan_in, fan_out):
        kw, kb = jax.random.split(k)
        lim = 1.0 / (fan_in ** 0.5)
        w = jax.random.uniform(kw, (fan_out, fan_in), jnp.float32, -lim, lim)
        b = jax.random.uniform(kb, (fan_out,), jnp.float32, -lim, lim)
        return w, b

    def hyper(k):
        k1, k2 = jax.random.split(k)
        w1, b1 = linear(k1, state_size, 64)
        w2, b2 = linear(k2, 64, input_size * embedding_size)
        return (w1, b1, w2, b2)

    kq, kk, kv, kw, kb = jax.random.split(key, 5)
    E = embedding_size
    return {
        "hyper_q": hyper(kq),
        "hyper_k": hyper(kk),
        "hyper_v": hyper(kv),  # unused by the returned weights (kept for shape fidelity)
        "in_proj_weight": jax.random.uniform(kw, (3 * E, E), jnp.float32, -0.1, 0.1),
        "in_proj_bias": jax.random.uniform(kb, (3 * E,), jnp.float32, -0.1, 0.1),
    }


def reference(state, inputs, params, *, num_heads, embedding_size):
    E, H = embedding_size, num_heads
    B, L, I = inputs.shape

    def hyper(p):
        w1, b1, w2, b2 = p
        h = jnp.maximum(state @ w1.T + b1, 0.0)
        return (h @ w2.T + b2).reshape(B, I, E)

    wq, wk = hyper(params["hyper_q"]), hyper(params["hyper_k"])
    q = jnp.einsum("bli,bie->ble", inputs, wq)
    k = jnp.einsum("bli,bie->ble", inputs, wk)
    in_w, in_b = params["in_proj_weight"], params["in_proj_bias"]
    Q = q @ in_w[:E].T + in_b[:E]
    K = k @ in_w[E:2 * E].T + in_b[E:2 * E]
    hd = E // H
    Qh = Q.reshape(B, L, H, hd).transpose(0, 2, 1, 3) * (1.0 / (hd ** 0.5))
    Kh = K.reshape(B, L, H, hd).transpose(0, 2, 1, 3)
    scores = jnp.einsum("bhld,bhmd->bhlm", Qh, Kh)
    return jax.nn.softmax(scores, axis=-1).mean(axis=1)


# ------------------------------------------------------------------------------------ main
if __name__ == "__main__":
    B = 2
    state_size = 8
    input_size = 4
    num_heads = 2
    seq_len = 8
    embedding_size = 32

    key = jax.random.PRNGKey(0)
    k_state, k_inp, k_par = jax.random.split(key, 3)
    state = jax.random.normal(k_state, (B, state_size), jnp.float32)
    inputs = jax.random.normal(k_inp, (B, seq_len, input_size), jnp.float32)
    params = init_params(k_par, state_size, input_size, embedding_size)

    out = multihead_module_weights(state, inputs, params,
                                   num_heads=num_heads, embedding_size=embedding_size)
    out = jax.block_until_ready(out)

    assert out.shape == (B, seq_len, seq_len), out.shape
    ref = reference(state, inputs, params, num_heads=num_heads, embedding_size=embedding_size)
    if not jnp.allclose(out, ref, rtol=2e-3, atol=2e-3):
        raise AssertionError(f"mismatch: max abs err {jnp.max(jnp.abs(out - ref))}")
    if not jnp.allclose(out.sum(-1), jnp.ones((B, seq_len)), atol=1e-3):
        raise AssertionError("rows of attention weights do not sum to 1")

    print("KERNEL_OK")
</pallas_src>

<mosaic_0001>
module attributes {stable_mosaic.version = 11 : i64} {
  func.func @_mha_weights_kernel(%arg0: i32, %arg1: memref<1x1x8xf32, #tpu.memory_space<vmem>>, %arg2: memref<1x8x261xf32, #tpu.memory_space<vmem>>, %arg3: memref<2x8x261xf32, #tpu.memory_space<vmem>>, %arg4: memref<2x1x261xf32, #tpu.memory_space<vmem>>, %arg5: memref<2x261x32xf32, #tpu.memory_space<vmem>>, %arg6: memref<1x8x8xf32, #tpu.memory_space<vmem>>) attributes {dimension_semantics = [#tpu.dimension_semantics<parallel>], iteration_bounds = array<i64: 2>, scalar_prefetch = 0 : i64, scratch_operands = 0 : i64, tpu.core_type = #tpu.core_type<tc>, window_params = [{transform_indices = @transform_0, window_bounds = array<i64: 1, 1, 8>}, {transform_indices = @transform_1, window_bounds = array<i64: 1, 8, 261>}, {pipeline_mode = #tpu.pipeline_mode<synchronous>, transform_indices = @transform_2, window_bounds = array<i64: 2, 8, 261>}, {pipeline_mode = #tpu.pipeline_mode<synchronous>, transform_indices = @transform_3, window_bounds = array<i64: 2, 1, 261>}, {pipeline_mode = #tpu.pipeline_mode<synchronous>, transform_indices = @transform_4, window_bounds = array<i64: 2, 261, 32>}, {transform_indices = @transform_5, window_bounds = array<i64: 1, 8, 8>}]} {
    %c0 = arith.constant 0 : index
    %c0_0 = arith.constant 0 : index
    %c0_1 = arith.constant 0 : index
    %0 = vector.load %arg1[%c0, %c0_0, %c0_1] : memref<1x1x8xf32, #tpu.memory_space<vmem>>, vector<1x1x8xf32>
    %1 = vector.shape_cast %0 : vector<1x1x8xf32> to vector<1x8xf32>
    %c0_2 = arith.constant 0 : index
    %c0_3 = arith.constant 0 : index
    %c0_4 = arith.constant 0 : index
    %2 = vector.load %arg2[%c0_2, %c0_3, %c0_4] : memref<1x8x261xf32, #tpu.memory_space<vmem>>, vector<1x8x261xf32>
    %c0_5 = arith.constant 0 : index
    %c0_6 = arith.constant 0 : index
    %c0_7 = arith.constant 0 : index
    %3 = vector.load %arg3[%c0_5, %c0_6, %c0_7] : memref<2x8x261xf32, #tpu.memory_space<vmem>>, vector<1x8x261xf32>
    %4 = vector.shape_cast %3 : vector<1x8x261xf32> to vector<8x261xf32>
    %cst = arith.constant dense<0.000000e+00> : vector<1x261xf32>
    %5 = tpu.matmul %1, %4, %cst {dimension_numbers = #tpu.dot_dimension_numbers<[1], [0], [0], [1], [0, 0, 1, 1], [], []>} : vector<1x8xf32>, vector<8x261xf32>, vector<1x261xf32> -> vector<1x261xf32>
    %c0_8 = arith.constant 0 : index
    %c0_9 = arith.constant 0 : index
    %c0_10 = arith.constant 0 : index
    %6 = vector.load %arg4[%c0_8, %c0_9, %c0_10] : memref<2x1x261xf32, #tpu.memory_space<vmem>>, vector<1x1x261xf32>
    %7 = vector.shape_cast %6 : vector<1x1x261xf32> to vector<1x261xf32>
    %8 = arith.addf %5, %7 : vector<1x261xf32>
    %cst_11 = arith.constant 0.000000e+00 : f32
    %9 = vector.broadcast %cst_11 : f32 to vector<1x261xf32>
    %10 = arith.maximumf %8, %9 : vector<1x261xf32>
    %c1 = arith.constant 1 : index
    %c0_12 = arith.constant 0 : index
    %c0_13 = arith.constant 0 : index
    %11 = vector.load %arg3[%c1, %c0_12, %c0_13] : memref<2x8x261xf32, #tpu.memory_space<vmem>>, vector<1x8x261xf32>
    %12 = vector.shape_cast %11 : vector<1x8x261xf32> to vector<8x261xf32>
    %cst_14 = arith.constant dense<0.000000e+00> : vector<1x261xf32>
    %13 = tpu.matmul %1, %12, %cst_14 {dimension_numbers = #tpu.dot_dimension_numbers<[1], [0], [0], [1], [0, 0, 1, 1], [], []>} : vector<1x8xf32>, vector<8x261xf32>, vector<1x261xf32> -> vector<1x261xf32>
    %c1_15 = arith.constant 1 : index
    %c0_16 = arith.constant 0 : index
    %c0_17 = arith.constant 0 : index
    %14 = vector.load %arg4[%c1_15, %c0_16, %c0_17] : memref<2x1x261xf32, #tpu.memory_space<vmem>>, vector<1x1x261xf32>
    %15 = vector.shape_cast %14 : vector<1x1x261xf32> to vector<1x261xf32>
    %16 = arith.addf %13, %15 : vector<1x261xf32>
    %cst_18 = arith.constant 0.000000e+00 : f32
    %17 = vector.broadcast %cst_18 : f32 to vector<1x261xf32>
    %18 = arith.maximumf %16, %17 : vector<1x261xf32>
    %19 = vector.shape_cast %10 : vector<1x261xf32> to vector<1x1x261xf32>
    %20 = vector.broadcast %19 : vector<1x1x261xf32> to vector<1x8x261xf32>
    %21 = arith.mulf %2, %20 : vector<1x8x261xf32>
    %22 = vector.shape_cast %21 : vector<1x8x261xf32> to vector<8x261xf32>
    %23 = vector.shape_cast %18 : vector<1x261xf32> to vector<1x1x261xf32>
    %24 = vector.broadcast %23 : vector<1x1x261xf32> to vector<1x8x261xf32>
    %25 = arith.mulf %2, %24 : vector<1x8x261xf32>
    %26 = vector.shape_cast %25 : vector<1x8x261xf32> to vector<8x261xf32>
    %c0_19 = arith.constant 0 : index
    %c0_20 = arith.constant 0 : index
    %c0_21 = arith.constant 0 : index
    %27 = vector.load %arg5[%c0_19, %c0_20, %c0_21] : memref<2x261x32xf32, #tpu.memory_space<vmem>>, vector<1x261x32xf32>
    %28 = vector.shape_cast %27 : vector<1x261x32xf32> to vector<261x32xf32>
    %cst_22 = arith.constant dense<0.000000e+00> : vector<8x32xf32>
    %29 = tpu.matmul %22, %28, %cst_22 {dimension_numbers = #tpu.dot_dimension_numbers<[1], [0], [0], [1], [0, 0, 1, 1], [], []>} : vector<8x261xf32>, vector<261x32xf32>, vector<8x32xf32> -> vector<8x32xf32>
    %30 = vector.shape_cast %29 : vector<8x32xf32> to vector<1x8x32xf32>
    %c1_23 = arith.constant 1 : index
    %c0_24 = arith.constant 0 : index
    %c0_25 = arith.constant 0 : index
    %31 = vector.load %arg5[%c1_23, %c0_24, %c0_25] : memref<2x261x32xf32, #tpu.memory_space<vmem>>, vector<1x261x32xf32>
    %32 = vector.shape_cast %31 : vector<1x261x32xf32> to vector<261x32xf32>
    %cst_26 = arith.constant dense<0.000000e+00> : vector<8x32xf32>
    %33 = tpu.matmul %26, %32, %cst_26 {dimension_numbers = #tpu.dot_dimension_numbers<[1], [0], [0], [1], [0, 0, 1, 1], [], []>} : vector<8x261xf32>, vector<261x32xf32>, vector<8x32xf32> -> vector<8x32xf32>
    %34 = vector.shape_cast %33 : vector<8x32xf32> to vector<1x8x32xf32>
    %35 = vector.extract_strided_slice %30 {offsets = [0, 0, 0], sizes = [1, 8, 16], strides = [1, 1, 1]} : vector<1x8x32xf32> to vector<1x8x16xf32>
    %36 = vector.extract_strided_slice %30 {offsets = [0, 0, 16], sizes = [1, 8, 16], strides = [1, 1, 1]} : vector<1x8x32xf32> to vector<1x8x16xf32>
    %37 = tpu.concatenate %35, %36 in 0 : vector<1x8x16xf32>, vector<1x8x16xf32> -> vector<2x8x16xf32>
    %38 = vector.extract_strided_slice %34 {offsets = [0, 0, 0], sizes = [1, 8, 16], strides = [1, 1, 1]} : vector<1x8x32xf32> to vector<1x8x16xf32>
    %39 = vector.extract_strided_slice %34 {offsets = [0, 0, 16], sizes = [1, 8, 16], strides = [1, 1, 1]} : vector<1x8x32xf32> to vector<1x8x16xf32>
    %40 = tpu.concatenate %38, %39 in 0 : vector<1x8x16xf32>, vector<1x8x16xf32> -> vector<2x8x16xf32>
    "tpu.trace_start"() <{level = 10 : i32, message = "bld,bmd->blm"}> : () -> ()
    %cst_27 = arith.constant dense<0.000000e+00> : vector<2x8x8xf32>
    %41 = tpu.matmul %37, %40, %cst_27 {dimension_numbers = #tpu.dot_dimension_numbers<[2], [2], [1], [1], [0, 0, 0, 1, 1, 1], [0], [0]>} : vector<2x8x16xf32>, vector<2x8x16xf32>, vector<2x8x8xf32> -> vector<2x8x8xf32>
    "tpu.trace_stop"() : () -> ()
    %cst_28 = arith.constant dense<0xFF800000> : vector<2x8xf32>
    %42 = vector.multi_reduction <maximumf>, %41, %cst_28 [2] : vector<2x8x8xf32> to vector<2x8xf32>
    %43 = vector.shape_cast %42 : vector<2x8xf32> to vector<2x8x1xf32>
    %44 = vector.broadcast %43 : vector<2x8x1xf32> to vector<2x8x8xf32>
    %45 = arith.subf %41, %44 : vector<2x8x8xf32>
    %46 = math.exp %45 : vector<2x8x8xf32>
    %cst_29 = arith.constant dense<0.000000e+00> : vector<2x8xf32>
    %47 = vector.multi_reduction <add>, %46, %cst_29 [2] : vector<2x8x8xf32> to vector<2x8xf32>
    %48 = vector.shape_cast %47 : vector<2x8xf32> to vector<2x8x1xf32>
    %cst_30 = arith.constant 5.000000e-01 : f32
    %49 = vector.broadcast %cst_30 : f32 to vector<2x8x1xf32>
    %50 = arith.divf %49, %48 : vector<2x8x1xf32>
    %51 = vector.broadcast %50 : vector<2x8x1xf32> to vector<2x8x8xf32>
    %52 = arith.mulf %46, %51 : vector<2x8x8xf32>
    %53 = vector.extract_strided_slice %52 {offsets = [0, 0, 0], sizes = [1, 8, 8], strides = [1, 1, 1]} : vector<2x8x8xf32> to vector<1x8x8xf32>
    %54 = vector.extract_strided_slice %52 {offsets = [1, 0, 0], sizes = [1, 8, 8], strides = [1, 1, 1]} : vector<2x8x8xf32> to vector<1x8x8xf32>
    %55 = arith.addf %53, %54 : vector<1x8x8xf32>
    %c0_31 = arith.constant 0 : index
    %c0_32 = arith.constant 0 : index
    %c0_33 = arith.constant 0 : index
    %56 = vector.load %arg6[%c0_31, %c0_32, %c0_33] : memref<1x8x8xf32, #tpu.memory_space<vmem>>, vector<1x8x8xf32>
    tpu.vector_store %arg6[%c0_31, %c0_32, %c0_33], %55 {strides = array<i32>} : memref<1x8x8xf32, #tpu.memory_space<vmem>>, vector<1x8x8xf32>,
    return
  }
  func.func @transform_0(%arg0: i32) -> (i32, i32, i32) {
    %c0_i32 = arith.constant 0 : i32
    %c0_i32_0 = arith.constant 0 : i32
    %c0_i32_1 = arith.constant 0 : i32
    return %arg0, %c0_i32, %c0_i32_0 : i32, i32, i32
  }
  func.func @transform_1(%arg0: i32) -> (i32, i32, i32) {
    %c0_i32 = arith.constant 0 : i32
    %c0_i32_0 = arith.constant 0 : i32
    %c0_i32_1 = arith.constant 0 : i32
    return %arg0, %c0_i32, %c0_i32_0 : i32, i32, i32
  }
  func.func @transform_2(%arg0: i32) -> (i32, i32, i32) {
    %c0_i32 = arith.constant 0 : i32
    %c0_i32_0 = arith.constant 0 : i32
    %c0_i32_1 = arith.constant 0 : i32
    %c0_i32_2 = arith.constant 0 : i32
    return %c0_i32, %c0_i32_0, %c0_i32_1 : i32, i32, i32
  }
  func.func @transform_3(%arg0: i32) -> (i32, i32, i32) {
    %c0_i32 = arith.constant 0 : i32
    %c0_i32_0 = arith.constant 0 : i32
    %c0_i32_1 = arith.constant 0 : i32
    %c0_i32_2 = arith.constant 0 : i32
    return %c0_i32, %c0_i32_0, %c0_i32_1 : i32, i32, i32
  }
  func.func @transform_4(%arg0: i32) -> (i32, i32, i32) {
    %c0_i32 = arith.constant 0 : i32
    %c0_i32_0 = arith.constant 0 : i32
    %c0_i32_1 = arith.constant 0 : i32
    %c0_i32_2 = arith.constant 0 : i32
    return %c0_i32, %c0_i32_0, %c0_i32_1 : i32, i32, i32
  }
  func.func @transform_5(%arg0: i32) -> (i32, i32, i32) {
    %c0_i32 = arith.constant 0 : i32
    %c0_i32_0 = arith.constant 0 : i32
    %c0_i32_1 = arith.constant 0 : i32
    return %arg0, %c0_i32, %c0_i32_0 : i32, i32, i32
  }
}

</mosaic_0001>

<bundles_post_ra>
// kernel: tpu_custom_call.1
= control target key start
LH: loop header
LB: loop body
LE: loop exit
PB: predicated region body
PF: predicated region fallthrough
CT: control target
= control target key end

     0   :  { %10 = vsyncpa [#allocation3], 0  ;;  %s1918_s0 = inlined_call_operand.vmem [shape: f32[2,1,8], index: 0, kind: input, shape index: {}]   ;;  %s1919_s1 = inlined_call_operand.vmem [shape: f32[2,8,261], index: 1, kind: input, shape index: {}]   ;;  %s1920_s2 = inlined_call_operand.vmem [shape: f32[2,8,261], index: 2, kind: input, shape index: {}]   ;;  %s1921_s3 = inlined_call_operand.vmem [shape: f32[2,1,261], index: 3, kind: input, shape index: {}]   ;;  %s1922_s4 = inlined_call_operand.vmem [shape: f32[2,261,32], index: 4, kind: input, shape index: {}]   ;;  %s1923_s5 = inlined_call_operand.hbm [shape: f32[2,8,8], index: 5, kind: output, shape index: {}]  }
   0x1   :  { %12 = vsyncpa [#allocation3 + $0x1], 0  ;;  %s1547_s18 = smov 0   ;;  %s1549_s19 = smov 0  }
   0x2   :  { %s1551_s20 = smov 0   ;;  %s1553_s21 = smov 0  }
   0x3 LB: > { %s1568_s22 = sadd.s32 4294967295, %s1511_s21   ;;  %s1229_s23 = sadd.s32 4294967294, %s1511_s21   ;;  %s1511_s21 = sphi %s1553_s21, %s1929_s21   ;;  %s1507_s20 = sphi %s1551_s20, %s1928_s20   ;;  %s1503_s19 = sphi %s1549_s19, %s1927_s19   ;;  %s1499_s18 = sphi %s1547_s18, %s1926_s18  }
   0x4   : > { %s1572_s24 = sadd.s32 1, %s1511_s21   ;;  %s140_s25 = sadd.s32 1, %s1507_s20 }
   0x5   : > { %s137_s26 = ssub.s32 %s1511_s21, %s1572_s24  ;;  %p150_p0 = scmp.ne.s32.totalorder %s1507_s20, %s1503_s19 }
   0x6   : > { %p138_p1 = scmp.eq.s32.totalorder %s137_s26, 0  ;;  %p151_p2 = scmp.eq.s32.totalorder %s1568_s22, 1 }
   0x7   : > { %p156_p3 = scmp.ne.s32.totalorder %s1503_s19, %s1499_s18  ;;  %p157_p4 = scmp.eq.s32.totalorder %s1229_s23, 1 }
   0x8   : > { %s1583_s27 = scalar_select %p138_p1, %s1507_s20, %s140_s25  }
   0x9   : > { %p1585_p5 = por %p151_p2, %p150_p0  ;;  %p1589_p6 = por %p157_p4, %p156_p3 }
   0xa   : > { %p1232_p7 = scmp.ge.s32.totalorder %s1511_s21, 1  ;;  %p198_p8 = scmp.lt.s32.totalorder %s1511_s21, 3 }
   0xc   : > { %p199_p9 = pnand %p1232_p7, %p198_p8 }
   0xd   : > { %p229_p10 = scmp.lt.s32.totalorder (!%p199_p9), %s1568_s22, 1  ;;  %s226_s6 = sand.u32 (!%p199_p9), 1, %s1503_s19  }
   0xe   : > { %202 = sbr.rel (%p199_p9) target bundleno = 1097 (0x449), region = 40  ;;  %s1233_s7 = sshll.u32 (!%p199_p9), %s226_s6, 3 }
   0xf   : > { %s1285_s8 = sshll.u32 (!%p199_p9), %s1568_s22, 7  ;;  %s228_s9 = scalar_lea.vmem (!%p199_p9), [#allocation2], %s1233_s7 }
  0x10   : > { %s1161_s10 = sshll.u32 (!%p199_p9), %s228_s9, 4  ;;  %s1159_s14 = scalar_lea.hbm (!%p199_p9), %s1923_s5, %s1285_s8  ;;  %s1162_s10 = int_to_ptr.vmem [resolvable:$true] %s1161_s10 }
  0x11   : > { %s1148_s15 = scalar_lea.sflag (!%p199_p9), [#allocation3], %s226_s6  ;;  %s1516_s17 = smov (!%p199_p9), [#allocation2]  }
  0x13   : > { %v242_v0 = vld [vmem:[%s1920_s2 + $0x8] sm:$0xff]  ;;  %v241_v1 = vld [vmem:[%s1920_s2] sm:$0xff]  ;;  %v243_v2 = vld [vmem:[%s1920_s2 + $0x10] sm:$0xff]  ;;  %v1513_v3 = vmov 0.0   ;;  %s1611_s13 = scalar_select %p229_p10, %s1568_s22, 1  ;;  %vm1514_vm0 = vmmov 0   ;;  %v246_v42 = vlaneseq }
  0x14   : > { %295 = vmatprep.subr.mxu0 %v242_v0  ;;  %1370 = vmatprep.subr.mxu1 %v1513_v3  ;;  %v1238_v4 = vld [vmem:[%s1920_s2 + $0x20] sm:$0xff]  ;;  %vm261_vm1 = vcmask 64512   ;;  %v1237_v5 = vld [vmem:[%s1920_s2 + $0x18] sm:$0xff]  ;;  %v1239_v7 = vld [vmem:[%s1920_s2 + $0x28] sm:$0xff]  ;;  %vm642_vm2 = vcmask 1044480   ;;  %vm638_vm3 = vcmask 39936  }
  0x15   : > { %296 = vmatpush1.msra.mxu0 %v241_v1  ;;  %329 = vmatprep.mubr.f32.mxu0 %v1513_v3  ;;  %s231_s16 = scalar_lea.vmem %s1918_s0, %s1611_s13  ;;  %v636_v8 = vld [vmem:[%s1922_s4 + $0xf8] sm:$0xff]  ;;  %v635_v10 = vld [vmem:[%s1922_s4 + $0xf0] sm:$0xff]  ;;  %v634_v12 = vld [vmem:[%s1922_s4 + $0xe8] sm:$0xff]  ;;  %v247_v43 = vshrl.u32 %v246_v42, 7  ;;  %vm972_vm4 = vcmask 130048   ;;  %s1455_s22 = sshll.u32 %s1516_s17, 4  ;;  %s1456_s22 = int_to_ptr.vmem [resolvable:$false] %s1455_s22 }
  0x16   : > { %1371 = vmatpush3.msra.mxu1 %v243_v2  ;;  %1372 = vmatprep.mubr.msk.f32.mxu1 %vm1514_vm0, %v1513_v3  ;;  %v237_v6 = vld [vmem:[%s231_s16] sm:$0x1]  ;;  %v620_v9 = vld [vmem:[%s1922_s4 + $0x78] sm:$0xff]  ;;  %v619_v11 = vld [vmem:[%s1922_s4 + $0x70] sm:$0xff]  ;;  %s1400_s16 = smul.u32 24, %s1611_s13  ;;  %s1515_s13 = smov 112  }
  0x17   : > { %461 = vmatprep.subr.mxu0 %v1238_v4  ;;  %1375 = vmatprep.subr.mxu1 %v1513_v3  ;;  %v618_v13 = vld [vmem:[%s1922_s4 + $0x68] sm:$0xff]  ;;  %v633_v14 = vld [vmem:[%s1922_s4 + $0xe0] sm:$0xff]  ;;  %v632_v16 = vld [vmem:[%s1922_s4 + $0xd8] sm:$0xff]  ;;  %v1740_v44 = vsub.s32 0, %v247_v43  ;;  %v256_v45 = vsub.s32 2, %v247_v43  ;;  %v252_v47 = vsub.s32 1, %v247_v43  ;;  %p1458_p0 = scmp.lt.s32.totalorder %s1162_s10, %s1456_s22 }
  0x18   : > { %1235 = vmatmul.mubr.msk.f32.vlgmr.msra.gmra.mxu0 %vm261_vm1, %v237_v6  ;;  %1373 = vmatmul.mubr.msk.f32.vlgmr.msra.gmra.mxu1 %vm261_vm1, %v237_v6  ;;  %v617_v15 = vld [vmem:[%s1922_s4 + $0x60] sm:$0xff]  ;;  %v616_v17 = vld [vmem:[%s1922_s4 + $0x58] sm:$0xff]  ;;  %v631_v18 = vld [vmem:[%s1922_s4 + $0xd0] sm:$0xff]  ;;  %s236_s25 = scalar_lea.vmem %s1919_s1, %s1400_s16  ;;  %s1451_s16 = scalar_lea.vmem %s1162_s10, 128 }
  0x19   : > { %462 = vmatpush1.msra.mxu0 %v1237_v5  ;;  %495 = vmatprep.mubr.f32.mxu0 %v1513_v3  ;;  %v615_v19 = vld [vmem:[%s1922_s4 + $0x50] sm:$0xff]  ;;  %v630_v20 = vld [vmem:[%s1922_s4 + $0xc8] sm:$0xff]  ;;  %v629_v22 = vld [vmem:[%s1922_s4 + $0xc0] sm:$0xff]  ;;  %p1452_p11 = scmp.ne.s32.totalorder %s1162_s10, %s1451_s16  ;;  %s1457_s23 = scalar_lea.vmem %s1456_s22, 256 }
  0x1a   : > { %1376 = vmatpush3.msra.mxu1 %v1239_v7  ;;  %1377 = vmatprep.mubr.msk.f32.mxu1 %vm1514_vm0, %v1513_v3  ;;  %v614_v21 = vld [vmem:[%s1922_s4 + $0x48] sm:$0xff]  ;;  %v613_v23 = vld [vmem:[%s1922_s4 + $0x40] sm:$0xff]  ;;  %v628_v24 = vld [vmem:[%s1922_s4 + $0xb8] sm:$0xff]  ;;  %p1459_p1 = scmp.lt.s32.totalorder %s1457_s23, %s1451_s16 }
  0x1b   : > { %1292 = vmatprep.subr.mxu0 %v636_v8  ;;  %1380 = vmatprep.subr.mxu1 %v1513_v3  ;;  %v612_v25 = vld [vmem:[%s1922_s4 + $0x38] sm:$0xff]  ;;  %v627_v26 = vld [vmem:[%s1922_s4 + $0xb0] sm:$0xff]  ;;  %v626_v28 = vld [vmem:[%s1922_s4 + $0xa8] sm:$0xff]  ;;  %p1453_p12 = pnand %p1452_p11, %p1585_p5 }
  0x1c   : > { %1241 = vmatmul.mubr.msk.f32.vlgmr.msra.gmra.mxu0 %vm261_vm1, %v237_v6  ;;  %1378 = vmatmul.mubr.msk.f32.vlgmr.msra.gmra.mxu1 %vm261_vm1, %v237_v6  ;;  %v611_v27 = vld [vmem:[%s1922_s4 + $0x30] sm:$0xff]  ;;  %v610_v29 = vld [vmem:[%s1922_s4 + $0x28] sm:$0xff]  ;;  %v625_v30 = vld [vmem:[%s1922_s4 + $0xa0] sm:$0xff]  ;;  %p1460_p2 = por %p1459_p1, %p1458_p0 }
  0x1d   : > { %1293 = vmatpush3.msra.mxu0 %v620_v9  ;;  %1382 = vmatprep.mubr.msk.f32.mxu1 %vm1514_vm0, %v1513_v3  ;;  %v609_v31 = vld [vmem:[%s1922_s4 + $0x20] sm:$0xff]  ;;  %v624_v32 = vld [vmem:[%s1922_s4 + $0x98] sm:$0xff]  ;;  %v623_v34 = vld [vmem:[%s1922_s4 + $0x90] sm:$0xff]  ;;  %p1454_p13 = pneg %p1453_p12 }
  0x1e   : > { %1294 = vmatprep.subr.mxu0 %v635_v10  ;;  %v608_v33 = vld [vmem:[%s1922_s4 + $0x18] sm:$0xff]  ;;  %v637_v35 = vld [vmem:[%s1922_s4 + $0x100] sm:$0x1f]  ;;  %v607_v36 = vld [vmem:[%s1922_s4 + $0x10] sm:$0xff] }
  0x1f   : > { %1295 = vmatpush3.msra.mxu0 %v619_v11  ;;  %1381 = vmatpush3.msk.msra.mxu1 %vm642_vm2, %v637_v35  ;;  %v622_v37 = vld [vmem:[%s1922_s4 + $0x88] sm:$0xff]  ;;  %v1276_v38 = vld [vmem:[%s1922_s4 + $0x200] sm:$0xff]  ;;  %v240_v62 = vld [vmem:[%s236_s25 + $0x10] sm:$0xff]  ;;  %p1461_p3 = pnand %p1460_p2, %p1454_p13 }
  0x20   : > { %1296 = vmatprep.subr.mxu0 %v634_v12  ;;  %v606_v39 = vld [vmem:[%s1922_s4 + $0x8] sm:$0xff]  ;;  %1329 = vmatprep.subr.mxu1 %v1276_v38  ;;  %v621_v40 = vld [vmem:[%s1922_s4 + $0x80] sm:$0xff]  ;;  %v1254_v35 = vld [vmem:[%s1922_s4 + $0x150] sm:$0xff] }
  0x21   : > { %1297 = vmatpush3.msra.mxu0 %v618_v13  ;;  %v605_v41 = vld [vmem:[%s1922_s4] sm:$0xff]  ;;  %v239_v7 = vld [vmem:[%s236_s25 + $0x8] sm:$0xff]  ;;  %v1251_v42 = vld [vmem:[%s1922_s4 + $0x138] sm:$0xff] }
  0x22   : > { %1298 = vmatprep.subr.mxu0 %v633_v14  ;;  %v244_v46 = vld [vmem:[%s1921_s3] sm:$0x7]  ;;  %v1753_v55 = vld [vmem:[%s1921_s3 + $0x3] sm:$0x7]  ;;  %v1266_v43 = vld [vmem:[%s1922_s4 + $0x1b0] sm:$0xff] }
  0x23   : > { %1299 = vmatpush3.msra.mxu0 %v617_v15  ;;  %v249_v48 = vrot.slane %v244_v46, %v1740_v44  ;;  %v257_v49 = vrot.slane %v244_v46, %v256_v45  ;;  %v253_v50 = vrot.slane %v244_v46, %v252_v47  ;;  %v427_v58 = vrot.slane %v1753_v55, %v256_v45  ;;  %v1759_v2 = vld [vmem:[%s236_s25] sm:$0xff]  ;;  %v1275_v15 = vld [vmem:[%s1922_s4 + $0x1f8] sm:$0xff]  ;;  %v1250_v46 = vld [vmem:[%s1922_s4 + $0x130] sm:$0xff] }
  0x24   : > { %1300 = vmatprep.subr.mxu0 %v632_v16  ;;  %v423_v0 = vrot.slane %v1753_v55, %v252_v47  ;;  %v1260_v13 = vld [vmem:[%s1922_s4 + $0x180] sm:$0xff]  ;;  %v1265_v47 = vld [vmem:[%s1922_s4 + $0x1a8] sm:$0xff] }
  0x25   : > { %1301 = vmatpush3.msra.mxu0 %v616_v17  ;;  %v1268_v38 = vld [vmem:[%s1922_s4 + $0x1c0] sm:$0xff] }
  0x26   : > { %1302 = vmatprep.subr.mxu0 %v631_v18 }
  0x27   : > { %1303 = vmatpush3.msra.mxu0 %v615_v19  ;;  %v1259_v19 = vld [vmem:[%s1922_s4 + $0x178] sm:$0xff] }
  0x28   : > { %1304 = vmatprep.subr.mxu0 %v630_v20  ;;  %v1274_v20 = vld [vmem:[%s1922_s4 + $0x1f0] sm:$0xff] }
  0x29   : > { %1305 = vmatpush3.msra.mxu0 %v614_v21 }
  0x2a   : > { %1306 = vmatprep.subr.mxu0 %v629_v22 }
  0x2b   : > { %1307 = vmatpush3.msra.mxu0 %v613_v23  ;;  %v1277_v23 = vld [vmem:[%s1922_s4 + $0x208] sm:$0x1f] }
  0x2c   : > { %1308 = vmatprep.subr.mxu0 %v628_v24  ;;  %v1258_v24 = vld [vmem:[%s1922_s4 + $0x170] sm:$0xff] }
  0x2d   : > { %1309 = vmatpush3.msra.mxu0 %v612_v25  ;;  %v1273_v25 = vld [vmem:[%s1922_s4 + $0x1e8] sm:$0xff] }
  0x2e   : > { %1310 = vmatprep.subr.mxu0 %v627_v26 }
  0x2f   : > { %1311 = vmatpush3.msra.mxu0 %v611_v27  ;;  %v1257_v27 = vld [vmem:[%s1922_s4 + $0x168] sm:$0xff] }
  0x30   : > { %1312 = vmatprep.subr.mxu0 %v626_v28 }
  0x31   : > { %1313 = vmatpush3.msra.mxu0 %v610_v29  ;;  %v1272_v29 = vld [vmem:[%s1922_s4 + $0x1e0] sm:$0xff] }
  0x32   : > { %1314 = vmatprep.subr.mxu0 %v625_v30 }
  0x33   : > { %1315 = vmatpush3.msra.mxu0 %v609_v31  ;;  %v1256_v31 = vld [vmem:[%s1922_s4 + $0x160] sm:$0xff] }
  0x34   : > { %1316 = vmatprep.subr.mxu0 %v624_v32  ;;  %v1271_v32 = vld [vmem:[%s1922_s4 + $0x1d8] sm:$0xff] }
  0x35   : > { %1317 = vmatpush3.msra.mxu0 %v608_v33  ;;  %v1255_v33 = vld [vmem:[%s1922_s4 + $0x158] sm:$0xff] }
  0x36   : > { %1318 = vmatprep.subr.mxu0 %v623_v34  ;;  %v1270_v34 = vld [vmem:[%s1922_s4 + $0x1d0] sm:$0xff] }
  0x37   : > { %1319 = vmatpush3.msra.mxu0 %v607_v36  ;;  %v1269_v36 = vld [vmem:[%s1922_s4 + $0x1c8] sm:$0xff] }
  0x38   : > { %1320 = vmatprep.subr.mxu0 %v622_v37  ;;  %v1253_v37 = vld [vmem:[%s1922_s4 + $0x148] sm:$0xff] }
  0x39   : > { %1321 = vmatpush3.msra.mxu0 %v606_v39  ;;  %v1252_v39 = vld [vmem:[%s1922_s4 + $0x140] sm:$0xff] }
  0x3a   : > { %1322 = vmatprep.subr.mxu0 %v621_v40  ;;  %v419_v40 = vrot.slane %v1753_v55, %v1740_v44 }
  0x3b   : > { %1323 = vmatpush3.msra.mxu0 %v605_v41  ;;  %v1267_v41 = vld [vmem:[%s1922_s4 + $0x1b8] sm:$0xff] }
  0x3c   : > { %1385 = vmatprep.subr.mxu0 %v1513_v3 }
  0xd8   : > { %v331_v51 = vpop.f32.mrf.mxu0  ;;  %v402_v52 = vpop.f32.mrf.mxu1 }
  0xd9   : > { %v332_v53 = vadd.f32 %v331_v51, %v249_v48  ;;  %v403_v54 = vadd.f32 %v402_v52, %v257_v49  ;;  %v1249_v48 = vld [vmem:[%s1922_s4 + $0x128] sm:$0xff]  ;;  %v1264_v49 = vld [vmem:[%s1922_s4 + $0x1a0] sm:$0xff]  ;;  %v1263_v52 = vld [vmem:[%s1922_s4 + $0x198] sm:$0xff] }
  0xda   : > { %v333_v56 = vpop.f32.mrf.mxu0  ;;  %v1374_v57 = vpop.f32.mrf.mxu1  ;;  %v1248_v51 = vld [vmem:[%s1922_s4 + $0x120] sm:$0xff] }
  0xdb   : > { %v406_v59 = vmax.f32 %v332_v53, 0.0  ;;  %v408_v60 = vmax.f32 %v403_v54, 0.0  ;;  %v334_v61 = vadd.f32 %v333_v56, %v253_v50  ;;  %v1247_v53 = vld [vmem:[%s1922_s4 + $0x118] sm:$0xff]  ;;  %v1262_v54 = vld [vmem:[%s1922_s4 + $0x190] sm:$0xff]  ;;  %v1261_v57 = vld [vmem:[%s1922_s4 + $0x188] sm:$0xff] }
  0xdc   : > { %v1756_v63 = vpop.f32.mrf.mxu0  ;;  %v568_v1 = vpop.f32.mrf.mxu1  ;;  %v1246_v56 = vld [vmem:[%s1922_s4 + $0x110] sm:$0xff] }
  0xdd   : > { %v578_v4 = vrot.slane %v406_v59, %v1740_v44  ;;  %v586_v5 = vrot.slane %v408_v60, %v1740_v44  ;;  %v407_v6 = vmax.f32 %v334_v61, 0.0  ;;  %v569_v9 = vadd.f32 %v568_v1, %v427_v58  ;;  %v1245_v58 = vld [vmem:[%s1922_s4 + $0x108] sm:$0xff] }
  0xde   : > { %v499_v8 = vpop.f32.mrf.mxu0  ;;  %v1379_v10 = vpop.f32.mrf.mxu1  ;;  %v498_v45 = vadd.f32 %v1756_v63, %v419_v40 }
  0xdf   : > { %v589_v11 = vmul.f32 %v586_v5, %v240_v62  ;;  %v582_v12 = vrot.slane %v407_v6, %v1740_v44  ;;  %v587_v14 = vmul.f32 %v578_v4, %v1759_v2  ;;  %v500_v16 = vadd.f32 %v499_v8, %v423_v0 }
  0xe0   : > { %v574_v17 = vmax.f32 %v569_v9, 0.0  ;;  %v572_v50 = vmax.f32 %v498_v45, 0.0 }
  0xe1   : > { %1383 = vmatmul.mubr.msk.f32.vlgmr.msra.gmra.mxu1 %vm638_vm3, %v589_v11  ;;  %v588_v18 = vmul.f32 %v582_v12, %v239_v7  ;;  %v573_v21 = vmax.f32 %v500_v16, 0.0 }
  0xe2   : > { %1330 = vmatpush3.msra.mxu1 %v1260_v13  ;;  %v601_v22 = vrot.slane %v574_v17, %v1740_v44  ;;  %v593_v55 = vrot.slane %v572_v50, %v1740_v44 }
  0xe3   : > { %1331 = vmatprep.subr.mxu1 %v1275_v15  ;;  %710 = vmatprep.mubr.f32.mxu0 %v588_v18  ;;  %v597_v26 = vrot.slane %v573_v21, %v1740_v44 }
  0xe4   : > { %1332 = vmatpush3.msra.mxu1 %v1259_v19  ;;  %711 = vmatmul.mubr.f32.vlgmr.msra.gmra.mxu0 %v587_v14  ;;  %v604_v28 = vmul.f32 %v601_v22, %v240_v62  ;;  %v602_v59 = vmul.f32 %v593_v55, %v1759_v2 }
  0xe5   : > { %1333 = vmatprep.subr.mxu1 %v1274_v20  ;;  %1386 = vmatpush3.msk.msra.mxu0 %vm642_vm2, %v1277_v23  ;;  %v603_v30 = vmul.f32 %v597_v26, %v239_v7 }
  0xe6   : > { %1334 = vmatpush3.msra.mxu1 %v1258_v24  ;;  %1387 = vmatprep.mubr.msk.f32.mxu0 %vm1514_vm0, %v1513_v3 }
  0xe7   : > { %1335 = vmatprep.subr.mxu1 %v1273_v25  ;;  %1390 = vmatprep.subr.mxu0 %v1513_v3 }
  0xe8   : > { %1336 = vmatpush3.msra.mxu1 %v1257_v27  ;;  %890 = vmatprep.mubr.f32.mxu1 %v603_v30 }
  0xe9   : > { %1337 = vmatprep.subr.mxu1 %v1272_v29  ;;  %1388 = vmatmul.mubr.msk.f32.vlgmr.msra.gmra.mxu0 %vm638_vm3, %v604_v28 }
  0xea   : > { %1338 = vmatpush3.msra.mxu1 %v1256_v31  ;;  %1392 = vmatprep.mubr.msk.f32.mxu0 %vm1514_vm0, %v1513_v3 }
  0xeb   : > { %1339 = vmatprep.subr.mxu1 %v1271_v32 }
  0xec   : > { %1340 = vmatpush3.msra.mxu1 %v1255_v33 }
  0xed   : > { %1341 = vmatprep.subr.mxu1 %v1270_v34 }
  0xee   : > { %1342 = vmatpush3.msra.mxu1 %v1254_v35 }
  0xef   : > { %1343 = vmatprep.subr.mxu1 %v1269_v36 }
  0xf0   : > { %1344 = vmatpush3.msra.mxu1 %v1253_v37 }
  0xf1   : > { %1345 = vmatprep.subr.mxu1 %v1268_v38 }
  0xf2   : > { %1346 = vmatpush3.msra.mxu1 %v1252_v39 }
  0xf3   : > { %1347 = vmatprep.subr.mxu1 %v1267_v41 }
  0xf4   : > { %1348 = vmatpush3.msra.mxu1 %v1251_v42 }
  0xf5   : > { %1349 = vmatprep.subr.mxu1 %v1266_v43 }
  0xf6   : > { %1350 = vmatpush3.msra.mxu1 %v1250_v46 }
  0xf7   : > { %1351 = vmatprep.subr.mxu1 %v1265_v47 }
  0xf8   : > { %1352 = vmatpush3.msra.mxu1 %v1249_v48 }
  0xf9   : > { %1353 = vmatprep.subr.mxu1 %v1264_v49 }
  0xfa   : > { %1354 = vmatpush3.msra.mxu1 %v1248_v51 }
  0xfb   : > { %1355 = vmatprep.subr.mxu1 %v1263_v52 }
  0xfc   : > { %1356 = vmatpush3.msra.mxu1 %v1247_v53 }
  0xfd   : > { %1357 = vmatprep.subr.mxu1 %v1262_v54 }
  0xfe   : > { %1358 = vmatpush3.msra.mxu1 %v1246_v56 }
  0xff   : > { %1359 = vmatprep.subr.mxu1 %v1261_v57 }
 0x100   : > { %1360 = vmatpush3.msra.mxu1 %v1245_v58 }
 0x101   : > { %891 = vmatmul.mubr.f32.vlgmr.msra.gmra.mxu1 %v602_v59  ;;  %1395 = vmatprep.subr.mxu1 %v1513_v3 }
 0x102   : > { %1397 = vmatprep.mubr.msk.f32.mxu1 %vm1514_vm0, %v1513_v3 }
 0x1a1   : > { %v782_v44 = vpop.f32.mrf.mxu1 }
 0x1a3   : > { %v1384_v60 = vpop.f32.mrf.mxu1 }
 0x1a4   : > { %v1324_v61 = vpop.f32.mrf.mxu0 }
 0x1a6   : > { %v1325_v62 = vpop.f32.mrf.mxu0 }
 0x1a7   : > { %v1326_v6 = vadd.f32 %v1325_v62, %v1324_v61 }
 0x1a9   : > { %v962_v63 = vpop.f32.mrf.mxu0  ;;  %v783_v7 = vadd.f32 %v1326_v6, %v782_v44 }
 0x1ab   : > { %v1389_v0 = vpop.f32.mrf.mxu0 }
 0x1c1   : > { %v1361_v1 = vpop.f32.mrf.mxu1 }
 0x1c3   : > { %v1362_v4 = vpop.f32.mrf.mxu1 }
 0x1c4   : > { %v1363_v5 = vadd.f32 %v1362_v4, %v1361_v1 }
 0x1c6   : > { %v963_v2 = vadd.f32 %v1363_v5, %v962_v63 }
 0x1c8   : > { %970 = vrot.lane.b32.xlu0 %v963_v2, %s1515_s13  ;;  %1391 = vmatpush3.xpose.msk.msra.mxu0 %vm972_vm4, %v963_v2 }
 0x1cb   : > { %1393 = vmatmul.mubr.msk.f32.vlgmr.msra.gmra.mxu0 %vm972_vm4, %v783_v7 }
 0x1cc   : > { %967 = vrot.lane.b32.xlu0 %v783_v7, %s1515_s13 }
 0x23a   : > { %v971_v8 = vpop.permute.xlu0 %970 }
 0x23b   : > { %1396 = vmatpush3.xpose.msk.msra.mxu1 %vm972_vm4, %v971_v8 }
 0x23e   : > { %v968_v3 = vpop.permute.xlu0 %967 }
 0x23f   : > { %1398 = vmatmul.mubr.msk.f32.vlgmr.msra.gmra.mxu1 %vm972_vm4, %v968_v3 }
 0x28b   : > { %v1043_v9 = vpop.f32.mrf.mxu0 }
 0x28c   : > { %v1121_v10 = vsel %vm261_vm1, %v1043_v9, -inf }
 0x28d   : > { %1122 = vmax.xlane.f32.xlu1 %v1121_v10  ;;  %v1394_v11 = vpop.f32.mrf.mxu0 }
 0x2ff   : > { %v1117_v12 = vpop.f32.mrf.mxu1 }
 0x300   : > { %v1124_v13 = vsel %vm261_vm1, %v1117_v12, -inf }
 0x301   : > { %v1399_v14 = vpop.f32.mrf.mxu1  ;;  %1125 = vmax.xlane.f32.xlu1 %v1124_v13 }
 0x316   : > { %v1123_v15 = vpop.xlane.xlu1 %1122 }
 0x317   : > { %v1127_v16 = vsub.f32 %v1043_v9, %v1123_v15 }
 0x319   : > { %v1129_v17 = vmul.f32 1.442695, %v1127_v16 }
 0x31b   : > { %1443 = vpow2.f32 %v1129_v17 }
 0x328   : > { %v1444_v18 = vpop.eup %1443 }
 0x329   : > { %v1133_v19 = vsel %vm261_vm1, %v1444_v18, 0.0 }
 0x32a   : > { %1134 = vadd.xlane.f32.xlu0 %v1133_v19 }
 0x38a   : > { %v1126_v20 = vpop.xlane.xlu1 %1125 }
 0x38b   : > { %v1128_v21 = vsub.f32 %v1117_v12, %v1126_v20 }
 0x38d   : > { %v1131_v22 = vmul.f32 1.442695, %v1128_v21 }
 0x38f   : > { %1445 = vpow2.f32 %v1131_v22 }
 0x39c   : > { %v1446_v23 = vpop.eup %1445 }
 0x39d   : > { %v1136_v24 = vsel %vm261_vm1, %v1446_v23, 0.0 }
 0x39e   : > { %1137 = vadd.xlane.f32.xlu1 %v1136_v24 }
 0x3b3   : > { %v1135_v25 = vpop.xlane.xlu0 %1134 }
 0x3b4   : > { %1447 = vrcp.f32 %v1135_v25 }
 0x3c1   : > { %v1448_v27 = vpop.eup %1447 }
 0x3c2   : > { %v1140_v28 = vmul.f32 0.5, %v1448_v27 }
 0x3c4   : > { %v1143_v31 = vmul.f32 %v1444_v18, %v1140_v28 }
 0x427   : > { %v1138_v26 = vpop.xlane.xlu1 %1137 }
 0x428   : > { %1449 = vrcp.f32 %v1138_v26 }
 0x435   : > { %v1450_v29 = vpop.eup %1449 }
 0x436   : > { %v1142_v30 = vmul.f32 0.5, %v1450_v29 }
 0x438   : > { %v1144_v32 = vmul.f32 %v1446_v23, %v1142_v30 }
 0x43a   : > { %v1145_v33 = vadd.f32 %v1144_v32, %v1143_v31 }
 0x43c   : > { %1146 = vst.msk [vmem:[%s228_s9] sm:$0xff] %vm261_vm1, %v1145_v33 }
 0x43d   : > { %1464 = shalt.err (!%p1461_p3)
}
 0x43e   : > { %s1465_s25 = scalar_lea.hbm %s1159_s14, 128  ;;  %s1469_s13 = scalar_lea.hbm %s1923_s5, 256 }
 0x43f   : > { %p1466_p4 = scmp.ne.s32.totalorder %s1159_s14, %s1465_s25  ;;  %p1470_p9 = scmp.lt.s32.totalorder %s1159_s14, %s1923_s5 }
 0x440   : > { %p1471_p10 = scmp.lt.s32.totalorder %s1469_s13, %s1465_s25 }
 0x441   : > { %p1467_p7 = pnand %p1466_p4, %p1585_p5 }
 0x442   : > { %p1472_p11 = por %p1471_p10, %p1470_p9 }
 0x443   : > { %p1468_p8 = pneg %p1467_p7 }
 0x445   : > { %p1473_p12 = pnand %p1472_p11, %p1468_p8 }
 0x447   : > { %1476 = shalt.err (!%p1473_p12)
}
 0x448   : > { %1401 = dma.vmem_to_hbm [thread:$0]  (%p1585_p5), %s1162_s10, 128, %s1159_s14, %s1148_s15  }
 0x449 PF: > { %p1407_p13 = scmp.ge.s32.totalorder %s1511_s21, 2  ;;  %s1173_s8 = sand.u32 1, %s1499_s18  }
 0x44a   : > { %s1174_s9 = scalar_lea.sflag [#allocation3], %s1173_s8 }
 0x44b   : > { %p1404_p0 = pnand %p1407_p13, %p1589_p6 }
 0x44d   : > { %p1405_p1 = pneg %p1404_p0 }
 0x44f   : > { %1494 = dma.done.wait (%p1405_p1), %s1174_s9, 128  }
 0x450   : > { %1496 = vsyncadd (%p1405_p1), %s1174_s9, 4294967168  ;;  %p15_p2 = scmp.ge.s32.totalorder %s1572_s24, 4   ;;  %s1926_s18 = smov %s1503_s19 }
 0x451   : > { %s1927_s19 = smov %s1507_s20  ;;  %s1928_s20 = smov %s1583_s27 }
 0x452   : > { %s1929_s21 = smov %s1572_s24  ;;  %17 = sbr.rel (!%p15_p2) target bundleno = 3 (0x3), region = 81 }
 0x457   :  { %1179 = vsyncpa [#allocation3], 1 }
 0x458   :  { %1181 = vsyncpa [#allocation3 + $0x1], 1 }

</bundles_post_ra>
